<compile_context>
chip_gen: v7x
topology: tpu7x:2x2x1
jax: 0.10.0
libtpu: 0.0.40
codegen_flags: <defaults>
</compile_context>

<pallas_src>
import functools
import itertools

import numpy as np
import jax
import jax.numpy as jnp
from jax import lax
from jax.experimental import pallas as pl
from jax.experimental.pallas import tpu as pltpu


# ----------------------------- configuration -------------------------------
BATCH = 2
IMG = 128                    # input spatial size (NCHW: [B, 3, IMG, IMG])
ENCODED_IMAGE_SIZE = 3       # nn.AdaptiveAvgPool2d target (real module default: 14)
WIDTH = 8                    # scaled-down base width (real ResNet-101: 64)
EXP = 4                      # bottleneck expansion
LAYERS = (3, 4, 23, 3)       # ResNet-101 block counts
BN_EPS = 1e-5

VMEM_LIMIT_BYTES = 48 * 1024 * 1024    # safe on v5e/v6e (128 MiB) and v7x (64 MiB)
MATMUL_VMEM_BUDGET = 32 * 1024 * 1024  # target for the double-buffered block set


# ----------------------------- Pallas kernels ------------------------------
def _matmul_affine_kernel(a_ref, b_ref, s_ref, t_ref, o_ref, acc_ref, *, relu):
    # grid = (M tiles, N tiles, K tiles); K is last ("arbitrary") -> accumulate.
    k = pl.program_id(2)

    @pl.when(k == 0)
    def _():
        acc_ref[...] = jnp.zeros_like(acc_ref)

    acc_ref[...] += jnp.dot(a_ref[...], b_ref[...],
                            preferred_element_type=jnp.float32)

    @pl.when(k == pl.num_programs(2) - 1)
    def _():
        out = acc_ref[...] * s_ref[...] + t_ref[...]
        if relu:
            out = jnp.maximum(out, 0.0)
        o_ref[...] = out.astype(o_ref.dtype)


def _matmul_affine_res_kernel(a_ref, b_ref, s_ref, t_ref, r_ref, o_ref, acc_ref):
    # conv3 epilogue: relu((A @ B) * scale + bias + residual), residual fused.
    k = pl.program_id(2)

    @pl.when(k == 0)
    def _():
        acc_ref[...] = jnp.zeros_like(acc_ref)

    acc_ref[...] += jnp.dot(a_ref[...], b_ref[...],
                            preferred_element_type=jnp.float32)

    @pl.when(k == pl.num_programs(2) - 1)
    def _():
        out = acc_ref[...] * s_ref[...] + t_ref[...] + r_ref[...].astype(jnp.float32)
        o_ref[...] = jnp.maximum(out, 0.0).astype(o_ref.dtype)


def _conv3x3_kernel(x_ref, w_ref, s_ref, t_ref, o_ref, *, relu):
    # Direct 3x3 stride-1 conv for one image: 9 shifted-tap matmuls accumulated in
    # f32, fused BN affine (+ReLU).  No HBM im2col; all tap slices live in VMEM.
    oh, ow, cout = o_ref.shape[1], o_ref.shape[2], o_ref.shape[3]
    cin = x_ref.shape[3]
    acc = jnp.zeros((oh * ow, cout), jnp.float32)
    for i in range(3):
        for j in range(3):
            tap = x_ref[0, i:i + oh, j:j + ow, :].reshape(oh * ow, cin)
            acc = acc + jnp.dot(tap, w_ref[i * 3 + j],
                                preferred_element_type=jnp.float32)
    out = acc * s_ref[...] + t_ref[...]
    if relu:
        out = jnp.maximum(out, 0.0)
    o_ref[0] = out.reshape(oh, ow, cout).astype(o_ref.dtype)


def _max_taps_kernel(x_ref, o_ref):
    # x_ref tile: (K, tm, L) -> elementwise max over the K pooling taps.
    k = x_ref.shape[0]
    m = x_ref[0]
    for t in range(1, k):
        m = jnp.maximum(m, x_ref[t])
    o_ref[...] = m


def _adaptive_pool_kernel(w_ref, x_ref, o_ref):
    # (P, HW) bf16 pooling matrix @ (HW, C) bf16 feature map; f32 accumulate.
    o_ref[0] = jnp.dot(w_ref[...], x_ref[0], preferred_element_type=jnp.float32)


# ----------------------------- tile selection -------------------------------
def _divisor_tile(total, target, quantum):
    """Largest tile <= target that divides `total` and is a multiple of `quantum`;
    falls back to the full extent (a full-extent block is always layout-legal)."""
    if total <= target:
        return total
    t = (target // quantum) * quantum
    while t >= quantum:
        if total % t == 0:
            return t
        t -= quantum
    return total


def _pick_tiles(M, K, N, has_residual):
    """VMEM-budget-aware (tm, tk, tn): keeps the double-buffered block set under
    MATMUL_VMEM_BUDGET so full-width shapes fit v7x's 64 MiB VMEM / v5e defaults."""
    tm = _divisor_tile(M, 1024, 8)
    tk = _divisor_tile(K, 2048, 128)
    tn = _divisor_tile(N, 512, 128)

    def footprint(tm_, tk_, tn_):
        a = 2 * tm_ * tk_ * 2                       # bf16 A block, double-buffered
        b = 2 * tk_ * tn_ * 2                       # bf16 weight block, double-buffered
        o = 2 * tm_ * tn_ * 2                       # bf16 output block, double-buffered
        acc = tm_ * tn_ * 4                         # f32 VMEM accumulator scratch
        res = 2 * tm_ * tn_ * 2 if has_residual else 0
        affine = 2 * 2 * tn_ * 4                    # scale + bias blocks
        return a + b + o + acc + res + affine

    while footprint(tm, tk, tn) > MATMUL_VMEM_BUDGET:
        if M % 8 == 0 and tm > 8:
            nt = _divisor_tile(M, max(tm // 2, 8), 8)
            if nt < tm:
                tm = nt
                continue
        if K % 128 == 0 and tk > 128:
            nt = _divisor_tile(K, max(tk // 2, 128), 128)
            if nt < tk:
                tk = nt
                continue
        if N % 128 == 0 and tn > 128:
            nt = _divisor_tile(N, max(tn // 2, 128), 128)
            if nt < tn:
                tn = nt
                continue
        break
    return tm, tk, tn


# ------------------------------ op wrappers ---------------------------------
def matmul_affine(a, b, scale, bias, *, relu, residual=None):
    """out_bf16 = maybe_relu((a @ b) * scale + bias [+ residual]).

    a:[M,K] bf16, b:[K,N] bf16, scale/bias:[N] or [1,N] f32, residual:[M,N] bf16.
    """
    M, K = a.shape
    N = b.shape[1]
    tm, tk, tn = _pick_tiles(M, K, N, residual is not None)
    scale = scale.reshape(1, N)
    bias = bias.reshape(1, N)
    grid = (M // tm, N // tn, K // tk)
    in_specs = [
        pl.BlockSpec((tm, tk), lambda i, j, k: (i, k)),
        pl.BlockSpec((tk, tn), lambda i, j, k: (k, j)),
        pl.BlockSpec((1, tn), lambda i, j, k: (0, j)),
        pl.BlockSpec((1, tn), lambda i, j, k: (0, j)),
    ]
    out_spec = pl.BlockSpec((tm, tn), lambda i, j, k: (i, j))
    cparams = pltpu.CompilerParams(
        dimension_semantics=("parallel", "parallel", "arbitrary"),
        vmem_limit_bytes=VMEM_LIMIT_BYTES,
    )
    scratch = [pltpu.VMEM((tm, tn), jnp.float32)]
    out_shape = jax.ShapeDtypeStruct((M, N), jnp.bfloat16)
    if residual is None:
        return pl.pallas_call(
            functools.partial(_matmul_affine_kernel, relu=relu),
            out_shape=out_shape,
            grid=grid,
            in_specs=in_specs,
            out_specs=out_spec,
            scratch_shapes=scratch,
            compiler_params=cparams,
        )(a, b, scale, bias)
    # Residual-fused variant (always applies ReLU, matching the bottleneck tail).
    return pl.pallas_call(
        _matmul_affine_res_kernel,
        out_shape=out_shape,
        grid=grid,
        in_specs=in_specs + [pl.BlockSpec((tm, tn), lambda i, j, k: (i, j))],
        out_specs=out_spec,
        scratch_shapes=scratch,
        compiler_params=cparams,
    )(a, b, scale, bias, residual)


def conv3x3_bn_relu(x, p, *, relu=True):
    """Direct 3x3 / stride-1 / pad-1 conv + folded BN (+ReLU); no HBM im2col."""
    x = x.astype(jnp.bfloat16)
    n, h, w, cin = x.shape
    cout = p["wk"].shape[1]
    w9 = p["wk"].reshape(9, cin, cout)                   # (kh*kw, cin, cout) bf16
    xp = jnp.pad(x, ((0, 0), (1, 1), (1, 1), (0, 0)))
    return pl.pallas_call(
        functools.partial(_conv3x3_kernel, relu=relu),
        out_shape=jax.ShapeDtypeStruct((n, h, w, cout), jnp.bfloat16),
        grid=(n,),
        in_specs=[
            pl.BlockSpec((1, h + 2, w + 2, cin), lambda b: (b, 0, 0, 0)),
            pl.BlockSpec((9, cin, cout), lambda b: (0, 0, 0)),
            pl.BlockSpec((1, cout), lambda b: (0, 0)),
            pl.BlockSpec((1, cout), lambda b: (0, 0)),
        ],
        out_specs=pl.BlockSpec((1, h, w, cout), lambda b: (b, 0, 0, 0)),
        compiler_params=pltpu.CompilerParams(
            dimension_semantics=("parallel",),
            vmem_limit_bytes=VMEM_LIMIT_BYTES,
        ),
    )(xp, w9, p["scale"], p["bias"])


def max_over_taps(stacked):
    """stacked: [K, M, L] -> [M, L] elementwise maximum over the K taps."""
    k, M, L = stacked.shape
    tm = _divisor_tile(M, 1024, 8)
    return pl.pallas_call(
        _max_taps_kernel,
        out_shape=jax.ShapeDtypeStruct((M, L), stacked.dtype),
        grid=(M // tm,),
        in_specs=[pl.BlockSpec((k, tm, L), lambda i: (0, i, 0))],
        out_specs=pl.BlockSpec((tm, L), lambda i: (i, 0)),
        compiler_params=pltpu.CompilerParams(dimension_semantics=("parallel",)),
    )(stacked)


# ------------------------------- JAX glue ----------------------------------
def _shifted_strided_taps(xp, kh, kw, stride, n, oh, ow, c):
    taps = []
    for i in range(kh):
        for j in range(kw):
            taps.append(
                lax.slice(
                    xp,
                    (0, i, j, 0),
                    (n, i + stride * (oh - 1) + 1, j + stride * (ow - 1) + 1, c),
                    (1, stride, stride, 1),
                )
            )
    return taps


def _im2col(x, kh, kw, stride, padding):
    """Build bf16 patch matrix [n*oh*ow, kh*kw*c].  1x1 convs take the fast path."""
    x = x.astype(jnp.bfloat16)
    n, h, w, c = x.shape
    oh = (h + 2 * padding - kh) // stride + 1
    ow = (w + 2 * padding - kw) // stride + 1
    if kh == 1 and kw == 1 and padding == 0:
        if stride != 1:
            x = x[:, ::stride, ::stride, :]
        return x.reshape(n * oh * ow, c), (oh, ow)
    xp = jnp.pad(x, ((0, 0), (padding, padding), (padding, padding), (0, 0)))
    taps = _shifted_strided_taps(xp, kh, kw, stride, n, oh, ow, c)
    patches = jnp.stack(taps, axis=3)                       # [n, oh, ow, kh*kw, c]
    return patches.reshape(n * oh * ow, kh * kw * c), (oh, ow)


def conv_bn(x, p, *, kh, kw, stride, padding, relu, residual=None):
    """Conv2d (no bias) + folded eval-mode BatchNorm (+ReLU, + fused residual)."""
    if kh == 3 and kw == 3 and stride == 1 and padding == 1 and residual is None:
        return conv3x3_bn_relu(x, p, relu=relu)             # direct, no HBM im2col
    n = x.shape[0]
    a, (oh, ow) = _im2col(x, kh, kw, stride, padding)
    cout = p["wk"].shape[1]
    out = matmul_affine(a, p["wk"], p["scale"], p["bias"], relu=relu,
                        residual=residual)
    return out.reshape(n, oh, ow, cout)


def _lane_dense_max(stacked, out_shape):
    """Flatten [K, ...] to a lane-dense [K, M, L] view before the max kernel."""
    k = stacked.shape[0]
    total = int(np.prod(stacked.shape[1:]))
    lane = next((L for L in (512, 256, 128) if total % L == 0), stacked.shape[-1])
    flat = stacked.reshape(k, total // lane, lane)
    return max_over_taps(flat).reshape(out_shape)


def max_pool_3x3_s2(x):
    """Separable 3x3/s2 maxpool on bf16: max over 3 columns, then over 3 rows."""
    n, h, w, c = x.shape
    k, stride, pad = 3, 2, 1
    oh = (h + 2 * pad - k) // stride + 1
    ow = (w + 2 * pad - k) // stride + 1
    hp = h + 2 * pad
    xp = jnp.pad(
        x,
        ((0, 0), (pad, pad), (pad, pad), (0, 0)),
        constant_values=-jnp.inf,   # PyTorch maxpool padding never wins the max
    )
    # 1) max over the 3 kernel columns (stride 2 along W) for all padded rows.
    taps_w = [
        lax.slice(xp, (0, 0, j, 0), (n, hp, j + stride * (ow - 1) + 1, c),
                  (1, 1, stride, 1))
        for j in range(k)
    ]
    xw = _lane_dense_max(jnp.stack(taps_w, axis=0), (n, hp, ow, c))
    # 2) max over the 3 kernel rows (stride 2 along H).
    taps_h = [
        lax.slice(xw, (0, i, 0, 0), (n, i + stride * (oh - 1) + 1, ow, c),
                  (1, stride, 1, 1))
        for i in range(k)
    ]
    return _lane_dense_max(jnp.stack(taps_h, axis=0), (n, oh, ow, c))


def bottleneck(x, bp, ba):
    stride = ba["stride"]
    out = conv_bn(x, bp["conv1"], kh=1, kw=1, stride=1, padding=0, relu=True)
    out = conv_bn(out, bp["conv2"], kh=3, kw=3, stride=stride, padding=1, relu=True)
    if ba["down"]:
        identity = conv_bn(x, bp["down"], kh=1, kw=1, stride=stride, padding=0,
                           relu=False)
    else:
        identity = x
    cout = bp["conv3"]["wk"].shape[1]
    res = identity.reshape(-1, cout).astype(jnp.bfloat16)
    # conv3 with the residual add + ReLU fused into the matmul epilogue.
    return conv_bn(out, bp["conv3"], kh=1, kw=1, stride=1, padding=0,
                   relu=True, residual=res)


def _adaptive_pool_matrix(in_size, out_size):
    # Exact PyTorch AdaptiveAvgPool2d windows: start = floor(i*in/out),
    # end = ceil((i+1)*in/out).
    m = np.zeros((out_size, in_size), dtype=np.float32)
    for i in range(out_size):
        s = (i * in_size) // out_size
        e = -((-(i + 1) * in_size) // out_size)
        m[i, s:e] = 1.0 / (e - s)
    return m


def adaptive_avg_pool(x, out_size):
    """One batched pallas_call; bf16 inputs, f32 accumulate, C on the lanes."""
    n, h, w, c = x.shape
    p = out_size * out_size
    wmat = jnp.asarray(
        np.kron(_adaptive_pool_matrix(h, out_size), _adaptive_pool_matrix(w, out_size))
    ).astype(jnp.bfloat16)                                  # [out*out, h*w]
    xf = x.reshape(n, h * w, c).astype(jnp.bfloat16)
    out = pl.pallas_call(
        _adaptive_pool_kernel,
        out_shape=jax.ShapeDtypeStruct((n, p, c), jnp.float32),
        grid=(n,),
        in_specs=[
            pl.BlockSpec((p, h * w), lambda b: (0, 0)),
            pl.BlockSpec((1, h * w, c), lambda b: (b, 0, 0)),
        ],
        out_specs=pl.BlockSpec((1, p, c), lambda b: (b, 0, 0)),
        compiler_params=pltpu.CompilerParams(dimension_semantics=("parallel",)),
    )(wmat, xf)
    # Already channel-last: [B, enc, enc, C] == PyTorch permute(0, 2, 3, 1).
    return out.reshape(n, out_size, out_size, c)


def encoder_forward(images_nchw, params, *, arch, encoded_image_size):
    x = jnp.transpose(images_nchw, (0, 2, 3, 1)).astype(jnp.float32)   # NCHW -> NHWC
    x = conv_bn(x, params["stem"], kh=7, kw=7, stride=2, padding=3, relu=True)
    x = max_pool_3x3_s2(x)                                             # 3x3/s2
    for blocks_p, blocks_a in zip(params["stages"], arch):             # layer1..4
        for bp, ba in zip(blocks_p, blocks_a):
            x = bottleneck(x, bp, ba)
    return adaptive_avg_pool(x, encoded_image_size)                    # [B, e, e, C]


# --------------------------- deterministic params ---------------------------
def _init_conv_bn(key, cout, cin, kh, kw):
    k1, k2, k3, k4, k5 = jax.random.split(key, 5)
    fan_in = cin * kh * kw
    w = jax.random.normal(k1, (cout, cin, kh, kw), jnp.float32) * (2.0 / fan_in) ** 0.5
    gamma = 1.0 + 0.1 * jax.random.normal(k2, (cout,), jnp.float32)
    beta = 0.1 * jax.random.normal(k3, (cout,), jnp.float32)
    mean = 0.1 * jax.random.normal(k4, (cout,), jnp.float32)
    var = jnp.abs(jax.random.normal(k5, (cout,), jnp.float32)) + 0.5
    scale = gamma / jnp.sqrt(var + BN_EPS)          # eval-mode BN folded to affine
    bias = beta - mean * scale
    # Store the weight pre-transposed to [KH*KW*Cin, Cout] in bf16 (matches both the
    # im2col patch ordering and the direct-conv tap ordering) and the affine already
    # shaped [1, Cout]: no per-forward transpose glue, half the weight DMA bytes.
    wk = jnp.transpose(w, (2, 3, 1, 0)).reshape(kh * kw * cin, cout).astype(jnp.bfloat16)
    return {"wk": wk, "scale": scale.reshape(1, cout), "bias": bias.reshape(1, cout)}


def build_params(key):
    counter = itertools.count(1)

    def nk():
        return jax.random.fold_in(key, next(counter))

    params = {"stem": _init_conv_bn(nk(), WIDTH, 3, 7, 7)}
    in_ch = WIDTH
    stages_p, arch = [], []
    for si, (nblocks, stage_stride) in enumerate(zip(LAYERS, (1, 2, 2, 2))):
        planes = WIDTH * (2 ** si)
        out_ch = planes * EXP
        blocks_p, blocks_a = [], []
        for bi in range(nblocks):
            s = stage_stride if bi == 0 else 1
            has_down = bi == 0 and (s != 1 or in_ch != out_ch)
            bp = {
                "conv1": _init_conv_bn(nk(), planes, in_ch, 1, 1),
                "conv2": _init_conv_bn(nk(), planes, planes, 3, 3),
                "conv3": _init_conv_bn(nk(), out_ch, planes, 1, 1),
            }
            if has_down:
                bp["down"] = _init_conv_bn(nk(), out_ch, in_ch, 1, 1)
            blocks_p.append(bp)
            blocks_a.append({"stride": s, "down": has_down})
            in_ch = out_ch
        stages_p.append(blocks_p)
        arch.append(blocks_a)
    params["stages"] = stages_p
    return params, arch


# ---------------------------------- main ------------------------------------
if __name__ == "__main__":
    root = jax.random.PRNGKey(0)
    pkey, ikey = jax.random.split(root)

    params, arch = build_params(pkey)
    images = jax.random.normal(ikey, (BATCH, 3, IMG, IMG), jnp.float32)

    # --- sanity-check the fused matmul kernel against a jnp reference -------
    a = jax.random.normal(jax.random.fold_in(root, 123), (128, 37), jnp.float32)
    b = jax.random.normal(jax.random.fold_in(root, 456), (37, 16), jnp.float32)
    s = jnp.linspace(0.5, 1.5, 16, dtype=jnp.float32)
    t = jnp.linspace(-0.1, 0.1, 16, dtype=jnp.float32)
    a16, b16 = a.astype(jnp.bfloat16), b.astype(jnp.bfloat16)
    got = matmul_affine(a16, b16, s, t, relu=True).astype(jnp.float32)
    want = jnp.maximum(a16.astype(jnp.float32) @ b16.astype(jnp.float32) * s + t, 0.0)
    assert jnp.allclose(got, want, rtol=5e-2, atol=5e-2), "matmul kernel mismatch"
    res16 = want.astype(jnp.bfloat16)
    got_r = matmul_affine(a16, b16, s, t, relu=True, residual=res16).astype(jnp.float32)
    want_r = jnp.maximum(a16.astype(jnp.float32) @ b16.astype(jnp.float32) * s + t
                         + res16.astype(jnp.float32), 0.0)
    assert jnp.allclose(got_r, want_r, rtol=5e-2, atol=5e-2), "residual kernel mismatch"

    # --- sanity-check the direct 3x3 conv kernel against lax.conv -----------
    ck = jax.random.fold_in(root, 789)
    pc = _init_conv_bn(jax.random.fold_in(ck, 1), 24, 16, 3, 3)
    xc = jax.random.normal(jax.random.fold_in(ck, 2), (2, 8, 8, 16), jnp.float32)
    xc16 = xc.astype(jnp.bfloat16)
    got_c = conv3x3_bn_relu(xc16, pc).astype(jnp.float32)
    w_hwio = pc["wk"].astype(jnp.float32).reshape(3, 3, 16, 24)
    ref_c = lax.conv_general_dilated(xc16.astype(jnp.float32), w_hwio, (1, 1), "SAME",
                                     dimension_numbers=("NHWC", "HWIO", "NHWC"))
    ref_c = jnp.maximum(ref_c * pc["scale"] + pc["bias"], 0.0)
    assert jnp.allclose(got_c, ref_c, rtol=5e-2, atol=5e-2), "direct conv mismatch"

    # Whole forward pass under a single jit: one compiled graph, no per-op dispatch.
    fwd = jax.jit(functools.partial(encoder_forward, arch=arch,
                                    encoded_image_size=ENCODED_IMAGE_SIZE))
    out = jax.block_until_ready(fwd(images, params))

    expected_shape = (BATCH, ENCODED_IMAGE_SIZE, ENCODED_IMAGE_SIZE, WIDTH * 8 * EXP)
    assert out.shape == expected_shape, out.shape
    assert out.dtype == jnp.float32
    assert bool(jnp.all(jnp.isfinite(out)))

    print("KERNEL_OK")
</pallas_src>

<mosaic_0001>
module attributes {stable_mosaic.version = 11 : i64} {
  func.func @_matmul_affine_kernel(%arg0: i32, %arg1: i32, %arg2: i32, %arg3: memref<128x37xbf16, #tpu.memory_space<vmem>>, %arg4: memref<37x16xbf16, #tpu.memory_space<vmem>>, %arg5: memref<1x16xf32, #tpu.memory_space<vmem>>, %arg6: memref<1x16xf32, #tpu.memory_space<vmem>>, %arg7: memref<128x16xbf16, #tpu.memory_space<vmem>>, %arg8: memref<128x16xf32, #tpu.memory_space<vmem>>) attributes {dimension_semantics = [#tpu.dimension_semantics<parallel>, #tpu.dimension_semantics<parallel>, #tpu.dimension_semantics<arbitrary>], iteration_bounds = array<i64: 1, 1, 1>, scalar_prefetch = 0 : i64, scratch_operands = 1 : i64, tpu.core_type = #tpu.core_type<tc>, window_params = [{transform_indices = @transform_0, window_bounds = array<i64: 128, 37>}, {transform_indices = @transform_1, window_bounds = array<i64: 37, 16>}, {transform_indices = @transform_2, window_bounds = array<i64: 1, 16>}, {transform_indices = @transform_3, window_bounds = array<i64: 1, 16>}, {transform_indices = @transform_4, window_bounds = array<i64: 128, 16>}]} {
    %c0_i32 = arith.constant 0 : i32
    %0 = arith.cmpi eq, %arg2, %c0_i32 : i32
    %1 = arith.extui %0 : i1 to i32
    %c0_i32_0 = arith.constant 0 : i32
    %2 = arith.cmpi ne, %1, %c0_i32_0 : i32
    scf.if %2 {
      %cst_10 = arith.constant 0.000000e+00 : f32
      %12 = vector.broadcast %cst_10 : f32 to vector<128x16xf32>
      %c0_11 = arith.constant 0 : index
      %c0_12 = arith.constant 0 : index
      %13 = vector.load %arg8[%c0_11, %c0_12] : memref<128x16xf32, #tpu.memory_space<vmem>>, vector<128x16xf32>
      tpu.vector_store %arg8[%c0_11, %c0_12], %12 {strides = array<i32>} : memref<128x16xf32, #tpu.memory_space<vmem>>, vector<128x16xf32>,
    } else {
    }
    %c0 = arith.constant 0 : index
    %c0_1 = arith.constant 0 : index
    %3 = vector.load %arg8[%c0, %c0_1] : memref<128x16xf32, #tpu.memory_space<vmem>>, vector<128x16xf32>
    %c0_2 = arith.constant 0 : index
    %c0_3 = arith.constant 0 : index
    %4 = vector.load %arg3[%c0_2, %c0_3] : memref<128x37xbf16, #tpu.memory_space<vmem>>, vector<128x37xbf16>
    %c0_4 = arith.constant 0 : index
    %c0_5 = arith.constant 0 : index
    %5 = vector.load %arg4[%c0_4, %c0_5] : memref<37x16xbf16, #tpu.memory_space<vmem>>, vector<37x16xbf16>
    %cst = arith.constant dense<0.000000e+00> : vector<128x16xf32>
    %6 = tpu.matmul %4, %5, %cst {dimension_numbers = #tpu.dot_dimension_numbers<[1], [0], [0], [1], [0, 0, 1, 1], [], []>} : vector<128x37xbf16>, vector<37x16xbf16>, vector<128x16xf32> -> vector<128x16xf32>
    %7 = arith.addf %3, %6 : vector<128x16xf32>
    %c0_6 = arith.constant 0 : index
    %c0_7 = arith.constant 0 : index
    %8 = vector.load %arg8[%c0_6, %c0_7] : memref<128x16xf32, #tpu.memory_space<vmem>>, vector<128x16xf32>
    tpu.vector_store %arg8[%c0_6, %c0_7], %7 {strides = array<i32>} : memref<128x16xf32, #tpu.memory_space<vmem>>, vector<128x16xf32>,
    %c0_i32_8 = arith.constant 0 : i32
    %9 = arith.cmpi eq, %arg2, %c0_i32_8 : i32
    %10 = arith.extui %9 : i1 to i32
    %c0_i32_9 = arith.constant 0 : i32
    %11 = arith.cmpi ne, %10, %c0_i32_9 : i32
    scf.if %11 {
      %c0_10 = arith.constant 0 : index
      %c0_11 = arith.constant 0 : index
      %12 = vector.load %arg8[%c0_10, %c0_11] : memref<128x16xf32, #tpu.memory_space<vmem>>, vector<128x16xf32>
      %c0_12 = arith.constant 0 : index
      %c0_13 = arith.constant 0 : index
      %13 = vector.load %arg5[%c0_12, %c0_13] : memref<1x16xf32, #tpu.memory_space<vmem>>, vector<1x16xf32>
      %14 = vector.broadcast %13 : vector<1x16xf32> to vector<128x16xf32>
      %15 = arith.mulf %12, %14 : vector<128x16xf32>
      %c0_14 = arith.constant 0 : index
      %c0_15 = arith.constant 0 : index
      %16 = vector.load %arg6[%c0_14, %c0_15] : memref<1x16xf32, #tpu.memory_space<vmem>>, vector<1x16xf32>
      %17 = vector.broadcast %16 : vector<1x16xf32> to vector<128x16xf32>
      %18 = arith.addf %15, %17 : vector<128x16xf32>
      %cst_16 = arith.constant 0.000000e+00 : f32
      %19 = vector.broadcast %cst_16 : f32 to vector<128x16xf32>
      %20 = arith.maximumf %18, %19 : vector<128x16xf32>
      %21 = arith.truncf %20 : vector<128x16xf32> to vector<128x16xbf16>
      %c0_17 = arith.constant 0 : index
      %c0_18 = arith.constant 0 : index
      %22 = vector.load %arg7[%c0_17, %c0_18] : memref<128x16xbf16, #tpu.memory_space<vmem>>, vector<128x16xbf16>
      tpu.vector_store %arg7[%c0_17, %c0_18], %21 {strides = array<i32>} : memref<128x16xbf16, #tpu.memory_space<vmem>>, vector<128x16xbf16>,
    } else {
    }
    return
  }
  func.func @transform_0(%arg0: i32, %arg1: i32, %arg2: i32) -> (i32, i32) {
    %c0_i32 = arith.constant 0 : i32
    return %arg0, %arg2 : i32, i32
  }
  func.func @transform_1(%arg0: i32, %arg1: i32, %arg2: i32) -> (i32, i32) {
    %c0_i32 = arith.constant 0 : i32
    return %arg2, %arg1 : i32, i32
  }
  func.func @transform_2(%arg0: i32, %arg1: i32, %arg2: i32) -> (i32, i32) {
    %c0_i32 = arith.constant 0 : i32
    %c0_i32_0 = arith.constant 0 : i32
    return %c0_i32, %arg1 : i32, i32
  }
  func.func @transform_3(%arg0: i32, %arg1: i32, %arg2: i32) -> (i32, i32) {
    %c0_i32 = arith.constant 0 : i32
    %c0_i32_0 = arith.constant 0 : i32
    return %c0_i32, %arg1 : i32, i32
  }
  func.func @transform_4(%arg0: i32, %arg1: i32, %arg2: i32) -> (i32, i32) {
    %c0_i32 = arith.constant 0 : i32
    return %arg0, %arg1 : i32, i32
  }
}

</mosaic_0001>

<bundles_post_ra>
// kernel: tpu_custom_call.1
= control target key start
LH: loop header
LB: loop body
LE: loop exit
PB: predicated region body
PF: predicated region fallthrough
CT: control target
= control target key end

     0   :  { %vm156_vm0 = vcmask 1041408   ;;  %vm157_vm1 = vcmask 1042432   ;;  %vm131_vm2 = vcmask 302080   ;;  %v564_v1 = vmov 65535   ;;  %s770_s1 = inlined_call_operand.vmem [shape: bf16[37,16], index: 1, kind: input, shape index: {}]   ;;  %s771_s0 = inlined_call_operand.vmem [shape: bf16[128,37], index: 0, kind: input, shape index: {}]   ;;  %s772_s2 = inlined_call_operand.vmem [shape: f32[1,16], index: 2, kind: input, shape index: {}]   ;;  %s773_s3 = inlined_call_operand.vmem [shape: f32[1,16], index: 3, kind: input, shape index: {}]   ;;  %s774_s4 = inlined_call_operand.vmem [shape: bf16[128,16], index: 4, kind: output, shape index: {}]  }
   0x1   :  { %v553_v0 = vld [vmem:[%s770_s1] sm:$0xff]   ;;  %v158_v2 = vsel %vm156_vm0, 4294967295, %v564_v1  ;;  %v554_v3 = vld [vmem:[%s770_s1 + $0x8] sm:$0xff]   ;;  %v555_v5 = vld [vmem:[%s770_s1 + $0x10] ss:$0 sps:$4 sm:$0x77]  }
   0x2   :  { %v159_v4 = vsel %vm157_vm1, %v158_v2, 0  ;;  %523 = vmatprep.subr.bf16.mxu0 %v553_v0  ;;  %545 = vmatprep.subr.bf16.mxu1 %v553_v0  ;;  %v556_v6 = vld [vmem:[%s771_s0] sm:$0xff]   ;;  %vm22_vm3 = vcmask 130048   ;;  %v565_v9 = vmov 0.0   ;;  %v558_v10 = vld [vmem:[%s771_s0 + $0x8] sm:$0xff]   ;;  %v560_v12 = vld [vmem:[%s771_s0 + $0x10] sm:$0xff]  }
   0x3   :  { %524 = vmatpush3.bf16.msra.mxu0 %v553_v0  ;;  %548 = vmatpush3.bf16.msra.mxu1 %v553_v0  ;;  %v161_v7 = vand.u32 %v555_v5, %v159_v4  ;;  %v557_v8 = vld [vmem:[%s771_s0 + $0x20] sm:$0xff]   ;;  %25 = vst.msk [vmem:[#allocation2 + $0x10] sm:$0xff] %vm22_vm3, %v565_v9  ;;  %23 = vst.msk [vmem:[#allocation2] sm:$0xff] %vm22_vm3, %v565_v9  ;;  %v559_v11 = vld [vmem:[%s771_s0 + $0x28] sm:$0xff]   ;;  %vm438_vm4 = vcmask 125952  }
   0x4   :  { %525 = vmatprep.subr.bf16.mxu0 %v554_v3  ;;  %546 = vmatprep.subr.bf16.mxu1 %v554_v3  ;;  %24 = vst.msk [vmem:[#allocation2 + $0x8] sm:$0xff] %vm22_vm3, %v565_v9  ;;  %26 = vst.msk [vmem:[#allocation2 + $0x18] sm:$0xff] %vm22_vm3, %v565_v9  ;;  %v561_v13 = vld [vmem:[%s771_s0 + $0x30] sm:$0xff]   ;;  %v562_v14 = vld [vmem:[%s771_s0 + $0x18] sm:$0xff]  }
   0x5   :  { %529 = vmatprep.mubr.msk.bf16.mxu0 %vm131_vm2, %v556_v6  ;;  %537 = vmatprep.mubr.msk.bf16.mxu1 %vm131_vm2, %v557_v8  ;;  %27 = vst.msk [vmem:[#allocation2 + $0x20] sm:$0xff] %vm22_vm3, %v565_v9  ;;  %28 = vst.msk [vmem:[#allocation2 + $0x28] sm:$0xff] %vm22_vm3, %v565_v9  ;;  %v563_v15 = vld [vmem:[%s771_s0 + $0x38] sm:$0xff]   ;;  %v659_v44 = vld [vmem:[%s772_s2] ss:$0 sm:$0xff] }
   0x6   :  { %29 = vst.msk [vmem:[#allocation2 + $0x30] sm:$0xff] %vm22_vm3, %v565_v9  ;;  %30 = vst.msk [vmem:[#allocation2 + $0x38] sm:$0xff] %vm22_vm3, %v565_v9  ;;  %v664_v49 = vld [vmem:[%s773_s3] ss:$0 sm:$0xff] }
   0x7   :  { %31 = vst.msk [vmem:[#allocation2 + $0x40] sm:$0xff] %vm22_vm3, %v565_v9  ;;  %32 = vst.msk [vmem:[#allocation2 + $0x48] sm:$0xff] %vm22_vm3, %v565_v9  ;;  %526 = vmatpush3.bf16.msra.mxu0 %v554_v3  ;;  %549 = vmatpush3.bf16.msra.mxu1 %v554_v3 }
   0x8   :  { %33 = vst.msk [vmem:[#allocation2 + $0x50] sm:$0xff] %vm22_vm3, %v565_v9  ;;  %34 = vst.msk [vmem:[#allocation2 + $0x58] sm:$0xff] %vm22_vm3, %v565_v9  ;;  %527 = vmatprep.subr.bf16.mxu0 %v161_v7  ;;  %547 = vmatprep.subr.bf16.mxu1 %v161_v7 }
   0x9   :  { %35 = vst.msk [vmem:[#allocation2 + $0x60] sm:$0xff] %vm22_vm3, %v565_v9  ;;  %36 = vst.msk [vmem:[#allocation2 + $0x68] sm:$0xff] %vm22_vm3, %v565_v9 }
   0xa   :  { %37 = vst.msk [vmem:[#allocation2 + $0x70] sm:$0xff] %vm22_vm3, %v565_v9  ;;  %38 = vst.msk [vmem:[#allocation2 + $0x78] sm:$0xff] %vm22_vm3, %v565_v9  ;;  %v41_v16 = vld [vmem:[#allocation2 + $0x10] sm:$0xff]  ;;  %v39_v18 = vld [vmem:[#allocation2] sm:$0xff] }
   0xb   :  { %528 = vmatpush3.bf16.msra.mxu0 %v161_v7  ;;  %550 = vmatpush3.bf16.msra.mxu1 %v161_v7  ;;  %v42_v22 = vld [vmem:[#allocation2 + $0x18] sm:$0xff]  ;;  %v40_v28 = vld [vmem:[#allocation2 + $0x8] sm:$0xff] }
   0xc   :  { %v43_v42 = vld [vmem:[#allocation2 + $0x20] sm:$0xff]  ;;  %v44_v54 = vld [vmem:[#allocation2 + $0x28] sm:$0xff] }
   0xd   :  { %v45_v40 = vld [vmem:[#allocation2 + $0x30] sm:$0xff]  ;;  %v46_v47 = vld [vmem:[#allocation2 + $0x38] sm:$0xff] }
   0xe   :  { %530 = vmatmul.mubr.msk.bf16.vlgmr.msra.gmra.mrb[0].mxu0 %vm131_vm2, %v558_v10  ;;  %538 = vmatmul.mubr.msk.bf16.vlgmr.msra.gmra.mrb[0].mxu1 %vm131_vm2, %v559_v11  ;;  %v47_v19 = vld [vmem:[#allocation2 + $0x40] sm:$0xff]  ;;  %v48_v29 = vld [vmem:[#allocation2 + $0x48] sm:$0xff] }
   0xf   :  { %533 = vmatprep.mubr.msk.bf16.mxu0 %vm131_vm2, %v560_v12  ;;  %541 = vmatprep.mubr.msk.bf16.mxu1 %vm131_vm2, %v561_v13  ;;  %v49_v17 = vld [vmem:[#allocation2 + $0x50] sm:$0xff]  ;;  %v50_v23 = vld [vmem:[#allocation2 + $0x58] sm:$0xff] }
  0x10   :  { %v51_v43 = vld [vmem:[#allocation2 + $0x60] sm:$0xff]  ;;  %v52_v55 = vld [vmem:[#allocation2 + $0x68] sm:$0xff] }
  0x11   :  { %v53_v41 = vld [vmem:[#allocation2 + $0x70] sm:$0xff]  ;;  %v54_v48 = vld [vmem:[#allocation2 + $0x78] sm:$0xff] }
  0x16   :  { %534 = vmatmul.mubr.msk.bf16.gmra.mrb[4].mxu0 %vm131_vm2, %v562_v14  ;;  %542 = vmatmul.mubr.msk.bf16.gmra.mrb[4].mxu1 %vm131_vm2, %v563_v15 }
  0xe1   :  { %v531_v20 = vpop.f32.mrb[0].mxu0  ;;  %v539_v21 = vpop.f32.mrb[0].mxu1 }
  0xe2   :  { %v262_v24 = vadd.f32 %v531_v20, %v41_v16  ;;  %v270_v25 = vadd.f32 %v539_v21, %v49_v17  ;;  %v197_v26 = vpop.f32.mrb[1].mxu0  ;;  %v229_v27 = vpop.f32.mrb[1].mxu1 }
  0xe3   :  { %v260_v30 = vadd.f32 %v197_v26, %v39_v18  ;;  %v268_v31 = vadd.f32 %v229_v27, %v47_v19  ;;  %v532_v32 = vpop.f32.mrb[2].mxu0  ;;  %v540_v33 = vpop.f32.mrb[2].mxu1 }
  0xe4   :  { %279 = vst.msk [vmem:[#allocation2 + $0x10] sm:$0xff] %vm22_vm3, %v262_v24  ;;  %287 = vst.msk [vmem:[#allocation2 + $0x50] sm:$0xff] %vm22_vm3, %v270_v25  ;;  %v263_v34 = vadd.f32 %v532_v32, %v42_v22  ;;  %v271_v35 = vadd.f32 %v540_v33, %v50_v23  ;;  %v200_v36 = vpop.f32.mrb[3].mxu0  ;;  %v232_v37 = vpop.f32.mrb[3].mxu1 }
  0xe5   :  { %277 = vst.msk [vmem:[#allocation2] sm:$0xff] %vm22_vm3, %v260_v30  ;;  %285 = vst.msk [vmem:[#allocation2 + $0x40] sm:$0xff] %vm22_vm3, %v268_v31  ;;  %v261_v38 = vadd.f32 %v200_v36, %v40_v28  ;;  %v269_v39 = vadd.f32 %v232_v37, %v48_v29 }
  0xe6   :  { %280 = vst.msk [vmem:[#allocation2 + $0x18] sm:$0xff] %vm22_vm3, %v263_v34  ;;  %288 = vst.msk [vmem:[#allocation2 + $0x58] sm:$0xff] %vm22_vm3, %v271_v35 }
  0xe7   :  { %278 = vst.msk [vmem:[#allocation2 + $0x8] sm:$0xff] %vm22_vm3, %v261_v38  ;;  %286 = vst.msk [vmem:[#allocation2 + $0x48] sm:$0xff] %vm22_vm3, %v269_v39 }
  0xe9   :  { %v535_v45 = vpop.f32.mrb[4].mxu0  ;;  %v543_v46 = vpop.f32.mrb[4].mxu1 }
  0xea   :  { %v266_v50 = vadd.f32 %v535_v45, %v45_v40  ;;  %v274_v51 = vadd.f32 %v543_v46, %v53_v41  ;;  %v213_v52 = vpop.f32.mrb[5].mxu0  ;;  %v245_v53 = vpop.f32.mrb[5].mxu1 }
  0xeb   :  { %v298_v56 = vld [vmem:[#allocation2 + $0x10] sm:$0xff]  ;;  %v264_v58 = vadd.f32 %v213_v52, %v43_v42  ;;  %v272_v59 = vadd.f32 %v245_v53, %v51_v43  ;;  %v536_v60 = vpop.f32.mrb[6].mxu0  ;;  %v544_v61 = vpop.f32.mrb[6].mxu1 }
  0xec   :  { %v306_v57 = vld [vmem:[#allocation2 + $0x50] sm:$0xff]  ;;  %v321_v62 = vmul.f32 %v659_v44, %v298_v56  ;;  %v296_v0 = vld [vmem:[#allocation2] sm:$0xff]  ;;  %283 = vst.msk [vmem:[#allocation2 + $0x30] sm:$0xff] %vm22_vm3, %v266_v50  ;;  %291 = vst.msk [vmem:[#allocation2 + $0x70] sm:$0xff] %vm22_vm3, %v274_v51  ;;  %v267_v2 = vadd.f32 %v536_v60, %v46_v47  ;;  %v275_v3 = vadd.f32 %v544_v61, %v54_v48  ;;  %v216_v4 = vpop.f32.mrb[7].mxu0  ;;  %v248_v5 = vpop.f32.mrb[7].mxu1 }
  0xed   :  { %v329_v63 = vmul.f32 %v659_v44, %v306_v57  ;;  %v304_v1 = vld [vmem:[#allocation2 + $0x40] sm:$0xff]  ;;  %v319_v6 = vmul.f32 %v659_v44, %v296_v0  ;;  %v299_v8 = vld [vmem:[#allocation2 + $0x18] sm:$0xff]  ;;  %281 = vst.msk [vmem:[#allocation2 + $0x20] sm:$0xff] %vm22_vm3, %v264_v58  ;;  %289 = vst.msk [vmem:[#allocation2 + $0x60] sm:$0xff] %vm22_vm3, %v272_v59  ;;  %v265_v10 = vadd.f32 %v216_v4, %v44_v54 }
  0xee   :  { %v327_v7 = vmul.f32 %v659_v44, %v304_v1  ;;  %v307_v9 = vld [vmem:[#allocation2 + $0x58] sm:$0xff]  ;;  %v273_v11 = vadd.f32 %v248_v5, %v52_v55  ;;  %v344_v12 = vadd.f32 %v664_v49, %v321_v62  ;;  %v322_v14 = vmul.f32 %v659_v44, %v299_v8  ;;  %v297_v16 = vld [vmem:[#allocation2 + $0x8] sm:$0xff]  ;;  %284 = vst.msk [vmem:[#allocation2 + $0x38] sm:$0xff] %vm22_vm3, %v267_v2 }
  0xef   :  { %v352_v13 = vadd.f32 %v664_v49, %v329_v63  ;;  %v330_v15 = vmul.f32 %v659_v44, %v307_v9  ;;  %v305_v17 = vld [vmem:[#allocation2 + $0x48] sm:$0xff]  ;;  %292 = vst.msk [vmem:[#allocation2 + $0x78] sm:$0xff] %vm22_vm3, %v275_v3  ;;  %v342_v18 = vadd.f32 %v664_v49, %v319_v6  ;;  %v320_v20 = vmul.f32 %v659_v44, %v297_v16 }
  0xf0   :  { %v350_v19 = vadd.f32 %v664_v49, %v327_v7  ;;  %v328_v21 = vmul.f32 %v659_v44, %v305_v17  ;;  %282 = vst.msk [vmem:[#allocation2 + $0x28] sm:$0xff] %vm22_vm3, %v265_v10  ;;  %290 = vst.msk [vmem:[#allocation2 + $0x68] sm:$0xff] %vm22_vm3, %v273_v11  ;;  %v360_v22 = vmax.f32 %v344_v12, 0.0  ;;  %v345_v24 = vadd.f32 %v664_v49, %v322_v14 }
  0xf1   :  { %v368_v23 = vmax.f32 %v352_v13, 0.0  ;;  %v353_v25 = vadd.f32 %v664_v49, %v330_v15  ;;  %v358_v26 = vmax.f32 %v342_v18, 0.0  ;;  %v343_v28 = vadd.f32 %v664_v49, %v320_v20 }
  0xf2   :  { %v366_v27 = vmax.f32 %v350_v19, 0.0  ;;  %v351_v29 = vadd.f32 %v664_v49, %v328_v21  ;;  %v498_v30 = vpack.c.bf16 %v360_v22, %v360_v22  ;;  %v361_v32 = vmax.f32 %v345_v24, 0.0 }
  0xf3   :  { %v506_v31 = vpack.c.bf16 %v368_v23, %v368_v23  ;;  %v369_v33 = vmax.f32 %v353_v25, 0.0  ;;  %v496_v34 = vpack.c.bf16 %v358_v26, %v358_v26  ;;  %v359_v36 = vmax.f32 %v343_v28, 0.0  ;;  %v302_v38 = vld [vmem:[#allocation2 + $0x30] sm:$0xff] }
  0xf4   :  { %v504_v35 = vpack.c.bf16 %v366_v27, %v366_v27  ;;  %v367_v37 = vmax.f32 %v351_v29, 0.0  ;;  %v310_v39 = vld [vmem:[#allocation2 + $0x70] sm:$0xff]  ;;  %441 = vst.msk [vmem:[%s774_s4 + $0x8] sm:$0xf] %vm438_vm4, %v498_v30  ;;  %v499_v40 = vpack.c.bf16 %v361_v32, %v361_v32  ;;  %v325_v42 = vmul.f32 %v659_v44, %v302_v38  ;;  %v300_v45 = vld [vmem:[#allocation2 + $0x20] sm:$0xff] }
  0xf5   :  { %449 = vst.msk [vmem:[%s774_s4 + $0x28] sm:$0xf] %vm438_vm4, %v506_v31  ;;  %v507_v41 = vpack.c.bf16 %v369_v33, %v369_v33  ;;  %v333_v43 = vmul.f32 %v659_v44, %v310_v39  ;;  %v308_v46 = vld [vmem:[#allocation2 + $0x60] sm:$0xff]  ;;  %439 = vst.msk [vmem:[%s774_s4] sm:$0xf] %vm438_vm4, %v496_v34  ;;  %v497_v47 = vpack.c.bf16 %v359_v36, %v359_v36  ;;  %v303_v52 = vld [vmem:[#allocation2 + $0x38] sm:$0xff] }
  0xf6   :  { %447 = vst.msk [vmem:[%s774_s4 + $0x20] sm:$0xf] %vm438_vm4, %v504_v35  ;;  %v505_v48 = vpack.c.bf16 %v367_v37, %v367_v37  ;;  %v323_v50 = vmul.f32 %v659_v44, %v300_v45  ;;  %v331_v51 = vmul.f32 %v659_v44, %v308_v46  ;;  %v311_v53 = vld [vmem:[#allocation2 + $0x78] sm:$0xff]  ;;  %442 = vst.msk [vmem:[%s774_s4 + $0xc] sm:$0xf] %vm438_vm4, %v499_v40 }
  0xf7   :  { %450 = vst.msk [vmem:[%s774_s4 + $0x2c] sm:$0xf] %vm438_vm4, %v507_v41  ;;  %v348_v54 = vadd.f32 %v664_v49, %v325_v42  ;;  %v356_v55 = vadd.f32 %v664_v49, %v333_v43  ;;  %v326_v56 = vmul.f32 %v659_v44, %v303_v52  ;;  %v334_v57 = vmul.f32 %v659_v44, %v311_v53  ;;  %v301_v58 = vld [vmem:[#allocation2 + $0x28] sm:$0xff] }
  0xf8   :  { %v309_v59 = vld [vmem:[#allocation2 + $0x68] sm:$0xff]  ;;  %440 = vst.msk [vmem:[%s774_s4 + $0x4] sm:$0xf] %vm438_vm4, %v497_v47  ;;  %448 = vst.msk [vmem:[%s774_s4 + $0x24] sm:$0xf] %vm438_vm4, %v505_v48  ;;  %v346_v60 = vadd.f32 %v664_v49, %v323_v50  ;;  %v354_v61 = vadd.f32 %v664_v49, %v331_v51  ;;  %v324_v62 = vmul.f32 %v659_v44, %v301_v58 }
  0xf9   :  { %v332_v63 = vmul.f32 %v659_v44, %v309_v59  ;;  %v364_v0 = vmax.f32 %v348_v54, 0.0  ;;  %v372_v1 = vmax.f32 %v356_v55, 0.0  ;;  %v349_v2 = vadd.f32 %v664_v49, %v326_v56 }
  0xfa   :  { %v357_v3 = vadd.f32 %v664_v49, %v334_v57  ;;  %v362_v4 = vmax.f32 %v346_v60, 0.0  ;;  %v370_v5 = vmax.f32 %v354_v61, 0.0  ;;  %v347_v6 = vadd.f32 %v664_v49, %v324_v62 }
  0xfb   :  { %v355_v7 = vadd.f32 %v664_v49, %v332_v63  ;;  %v502_v8 = vpack.c.bf16 %v364_v0, %v364_v0  ;;  %v510_v9 = vpack.c.bf16 %v372_v1, %v372_v1  ;;  %v365_v10 = vmax.f32 %v349_v2, 0.0 }
  0xfc   :  { %v373_v11 = vmax.f32 %v357_v3, 0.0  ;;  %v500_v12 = vpack.c.bf16 %v362_v4, %v362_v4  ;;  %v508_v13 = vpack.c.bf16 %v370_v5, %v370_v5  ;;  %v363_v14 = vmax.f32 %v347_v6, 0.0 }
  0xfd   :  { %v371_v44 = vmax.f32 %v355_v7, 0.0  ;;  %445 = vst.msk [vmem:[%s774_s4 + $0x18] sm:$0xf] %vm438_vm4, %v502_v8  ;;  %453 = vst.msk [vmem:[%s774_s4 + $0x38] sm:$0xf] %vm438_vm4, %v510_v9  ;;  %v503_v15 = vpack.c.bf16 %v365_v10, %v365_v10 }
  0xfe   :  { %v511_v49 = vpack.c.bf16 %v373_v11, %v373_v11  ;;  %443 = vst.msk [vmem:[%s774_s4 + $0x10] sm:$0xf] %vm438_vm4, %v500_v12  ;;  %451 = vst.msk [vmem:[%s774_s4 + $0x30] sm:$0xf] %vm438_vm4, %v508_v13  ;;  %v501_v16 = vpack.c.bf16 %v363_v14, %v363_v14 }
  0xff   :  { %v509_v17 = vpack.c.bf16 %v371_v44, %v371_v44  ;;  %446 = vst.msk [vmem:[%s774_s4 + $0x1c] sm:$0xf] %vm438_vm4, %v503_v15 }
 0x100   :  { %454 = vst.msk [vmem:[%s774_s4 + $0x3c] sm:$0xf] %vm438_vm4, %v511_v49  ;;  %444 = vst.msk [vmem:[%s774_s4 + $0x14] sm:$0xf] %vm438_vm4, %v501_v16 }
 0x101   :  { %452 = vst.msk [vmem:[%s774_s4 + $0x34] sm:$0xf] %vm438_vm4, %v509_v17 }

</bundles_post_ra>
